<compile_context>
chip_gen: v7x
topology: tpu7x:2x2x1
jax: 0.10.0
libtpu: 0.0.40
codegen_flags: <defaults>
</compile_context>

<pallas_src>
import functools

import jax
import jax.numpy as jnp
from jax.experimental import pallas as pl
from jax.experimental.pallas import tpu as pltpu


def _pseudo_clr_kernel(x_ref, o_ref, *, inv_d):
    # x_ref / o_ref: (ROW_TILE, D) logical blocks in VMEM (lane padding is
    # masked by Mosaic for loads, reductions, and stores).
    #
    # Reuse o_ref as the log1p temp: avoids a block-sized VMEM intermediate;
    # each o_ref[...] read below is consumed immediately (per-vreg liveness).
    o_ref[...] = jnp.log1p(x_ref[...])                       # EUP + VPU
    # Per-row sum, accumulated in f32 (exact no-op for f32 inputs, keeps the
    # mean precise for bf16 inputs).  inv_d is the compile-time 1/true-D.
    row_mean = jnp.sum(o_ref[...].astype(jnp.float32), axis=1,
                       keepdims=True) * inv_d                 # XLU reduce
    o_ref[...] = (o_ref[...].astype(jnp.float32) - row_mean).astype(o_ref.dtype)


def _round_up(x, m):
    return -(-x // m) * m


def _tpu_info():
    """(vmem_capacity_bytes, num_tensorcores) with conservative fallbacks."""
    vmem_cap = 64 * 1024 * 1024          # v7x per-TC VMEM (most restrictive)
    num_tc = 1
    try:
        info = pltpu.get_tpu_info()
        cap = getattr(info, "vmem_capacity_bytes", None)
        if isinstance(cap, int) and cap > 0:
            vmem_cap = cap
        for attr in ("num_cores", "num_tensorcores", "tensorcores_per_chip",
                     "core_count"):
            v = getattr(info, attr, None)
            if isinstance(v, int) and v > 0:
                num_tc = v
                break
    except Exception:
        pass
    return vmem_cap, num_tc


def _pick_row_tile(n, d, dtype, vmem_cap):
    itemsize = jnp.dtype(dtype).itemsize
    sub = max(8, 32 // itemsize)          # native sublane multiple: 8/16/32
    d_phys = _round_up(d, 128)            # physical lanes per row in VMEM
    row_bytes = d_phys * itemsize

    # Pipeline holds 2 double-buffered copies each of the input and output
    # block (4x block bytes); keep ample headroom for compiler scratch.
    buf_budget = min(int(vmem_cap * 0.6), 72 * 1024 * 1024)
    by_vmem = (buf_budget // (4 * row_bytes)) // sub * sub

    # ~4 MiB block target amortizes the ~0.35 us per-grid-step overhead to
    # <10-15% even at v7x's ~3.2 TB/s per-TC HBM bandwidth.
    target_bytes = 4 * 1024 * 1024
    by_target = (target_bytes // row_bytes) // sub * sub

    whole = _round_up(n, sub)             # never exceed the (rounded) array
    row_tile = max(sub, min(by_vmem, by_target, whole))

    # TODO(synk): for extremely wide feature tables where even a single
    # sublane-group of rows exceeds the VMEM budget, split D onto a second
    # ("arbitrary") grid axis with a partial-row-sum scratch accumulator.
    return int(row_tile), sub


def pseudo_clr(x, row_tile=None):
    """x: float [N, D]; returns log1p(x) centered by the per-row mean."""
    n, d = x.shape
    dtype = x.dtype
    vmem_cap, num_tc = _tpu_info()

    if row_tile is None:
        row_tile, sub = _pick_row_tile(n, d, dtype, vmem_cap)
        # Only on 2-TensorCore chips (v7x): keep >= 2 grid steps so the
        # "parallel" axis can shard across cores.  Skipped on 1-TC parts.
        if num_tc >= 2 and row_tile >= n and n > sub:
            row_tile = max(sub, _round_up((n + 1) // 2, sub))

    grid = (pl.cdiv(n, row_tile),)
    # ~48 MiB scoped VMEM on v7x (64 MiB physical), ~96 MiB on v5e/v6e (128).
    vmem_limit = int(min(vmem_cap * 3 // 4, 96 * 1024 * 1024))

    # Ragged N / D handled inside pallas_call: feature-dim block equals the
    # full array extent (masked lane stores), last row block is partial and
    # its out-of-bounds rows are dropped on store.  No wrapper pad / slice.
    return pl.pallas_call(
        functools.partial(_pseudo_clr_kernel, inv_d=float(1.0 / d)),
        out_shape=jax.ShapeDtypeStruct((n, d), dtype),
        grid_spec=pl.GridSpec(
            grid=grid,
            in_specs=[pl.BlockSpec((row_tile, d), lambda i: (i, 0))],
            out_specs=pl.BlockSpec((row_tile, d), lambda i: (i, 0)),
        ),
        compiler_params=pltpu.CompilerParams(
            dimension_semantics=("parallel",),
            vmem_limit_bytes=vmem_limit,
        ),
    )(x)


def pseudo_clr_ref(x):
    y = jnp.log1p(x)
    return y - jnp.mean(y, axis=1, keepdims=True)


if __name__ == "__main__":
    key = jax.random.PRNGKey(0)
    k1, k2, k3 = jax.random.split(key, 3)

    # Composition-table style inputs (non-negative counts / abundances).

    # Aligned shape.
    x1 = jax.random.uniform(k1, (16, 128), dtype=jnp.float32, minval=0.0, maxval=10.0)
    out1 = jax.block_until_ready(pseudo_clr(x1))
    ref1 = pseudo_clr_ref(x1)
    assert out1.shape == ref1.shape and out1.dtype == ref1.dtype
    assert jnp.allclose(out1, ref1, atol=1e-5, rtol=1e-5), "mismatch (aligned)"

    # Unaligned N and D: masked lane stores + partial row block.
    x2 = jax.random.uniform(k2, (13, 100), dtype=jnp.float32, minval=0.0, maxval=10.0)
    out2 = jax.block_until_ready(pseudo_clr(x2))
    ref2 = pseudo_clr_ref(x2)
    assert out2.shape == ref2.shape and out2.dtype == ref2.dtype
    assert jnp.allclose(out2, ref2, atol=1e-5, rtol=1e-5), "mismatch (unaligned)"

    # Multi-step grid with a partial last block (explicit small row tile).
    x3 = jax.random.uniform(k3, (20, 96), dtype=jnp.float32, minval=0.0, maxval=10.0)
    out3 = jax.block_until_ready(pseudo_clr(x3, row_tile=8))
    ref3 = pseudo_clr_ref(x3)
    assert out3.shape == ref3.shape and out3.dtype == ref3.dtype
    assert jnp.allclose(out3, ref3, atol=1e-5, rtol=1e-5), "mismatch (multi-block)"

    print("KERNEL_OK")
</pallas_src>

<mosaic_0001>
module attributes {stable_mosaic.version = 11 : i64} {
  func.func @_pseudo_clr_kernel(%arg0: i32, %arg1: memref<16x128xf32, #tpu.memory_space<vmem>>, %arg2: memref<16x128xf32, #tpu.memory_space<vmem>>) attributes {dimension_semantics = [#tpu.dimension_semantics<parallel>], iteration_bounds = array<i64: 1>, scalar_prefetch = 0 : i64, scratch_operands = 0 : i64, tpu.core_type = #tpu.core_type<tc>, window_params = [{transform_indices = @transform_0, window_bounds = array<i64: 16, 128>}, {transform_indices = @transform_1, window_bounds = array<i64: 16, 128>}]} {
    %c0 = arith.constant 0 : index
    %c0_0 = arith.constant 0 : index
    %0 = vector.load %arg1[%c0, %c0_0] : memref<16x128xf32, #tpu.memory_space<vmem>>, vector<16x128xf32>
    %1 = math.log1p %0 : vector<16x128xf32>
    %c0_1 = arith.constant 0 : index
    %c0_2 = arith.constant 0 : index
    %2 = vector.load %arg2[%c0_1, %c0_2] : memref<16x128xf32, #tpu.memory_space<vmem>>, vector<16x128xf32>
    tpu.vector_store %arg2[%c0_1, %c0_2], %1 {strides = array<i32>} : memref<16x128xf32, #tpu.memory_space<vmem>>, vector<16x128xf32>,
    %c0_3 = arith.constant 0 : index
    %c0_4 = arith.constant 0 : index
    %3 = vector.load %arg2[%c0_3, %c0_4] : memref<16x128xf32, #tpu.memory_space<vmem>>, vector<16x128xf32>
    %cst = arith.constant dense<0.000000e+00> : vector<16xf32>
    %4 = vector.multi_reduction <add>, %3, %cst [1] : vector<16x128xf32> to vector<16xf32>
    %5 = vector.shape_cast %4 : vector<16xf32> to vector<16x1xf32>
    %cst_5 = arith.constant 7.812500e-03 : f32
    %6 = vector.broadcast %cst_5 : f32 to vector<16x1xf32>
    %7 = arith.mulf %5, %6 : vector<16x1xf32>
    %c0_6 = arith.constant 0 : index
    %c0_7 = arith.constant 0 : index
    %8 = vector.load %arg2[%c0_6, %c0_7] : memref<16x128xf32, #tpu.memory_space<vmem>>, vector<16x128xf32>
    %9 = vector.broadcast %7 : vector<16x1xf32> to vector<16x128xf32>
    %10 = arith.subf %8, %9 : vector<16x128xf32>
    %c0_8 = arith.constant 0 : index
    %c0_9 = arith.constant 0 : index
    %11 = vector.load %arg2[%c0_8, %c0_9] : memref<16x128xf32, #tpu.memory_space<vmem>>, vector<16x128xf32>
    tpu.vector_store %arg2[%c0_8, %c0_9], %10 {strides = array<i32>} : memref<16x128xf32, #tpu.memory_space<vmem>>, vector<16x128xf32>,
    return
  }
  func.func @transform_0(%arg0: i32) -> (i32, i32) {
    %c0_i32 = arith.constant 0 : i32
    %c0_i32_0 = arith.constant 0 : i32
    return %arg0, %c0_i32 : i32, i32
  }
  func.func @transform_1(%arg0: i32) -> (i32, i32) {
    %c0_i32 = arith.constant 0 : i32
    %c0_i32_0 = arith.constant 0 : i32
    return %arg0, %c0_i32 : i32, i32
  }
}

</mosaic_0001>

<bundles_post_ra>
// kernel: tpu_custom_call.1
= control target key start
LH: loop header
LB: loop body
LE: loop exit
PB: predicated region body
PF: predicated region fallthrough
CT: control target
= control target key end

     0   :  { %6 = vsyncpa [#allocation3], 0  ;;  %s174_s0 = inlined_call_operand.hbm [shape: f32[16,128], index: 0, kind: input, shape index: {}]   ;;  %s175_s1 = inlined_call_operand.hbm [shape: f32[16,128], index: 1, kind: output, shape index: {}]  }
   0x1   :  { %7 = vsyncpa [#allocation4], 0  ;;  %s130_s6 = smov [#allocation2]   ;;  %s82_s10 = scalar_lea.hbm %s174_s0, 256 }
   0x2   :  { %s13_s7 = sshll.u32 %s130_s6, 4  ;;  %p83_p0 = scmp.ne.s32.totalorder %s174_s0, %s82_s10  ;;  %s14_s7 = int_to_ptr.vmem [resolvable:$true] %s13_s7 }
   0x3   :  { %p86_p1 = scmp.lt.u32.totalorder %s82_s10, %s174_s0 }
   0x5   :  { %p88_p2 = pnand %p86_p1, %p83_p0 }
   0x7   :  { %91 = shalt.err (!%p88_p2)
}
   0x8   :  { %s92_s15 = scalar_lea.vmem %s14_s7, 256  ;;  %p97_p4 = scmp.lt.s32.totalorder %s14_s7, %s14_s7 }
   0x9   :  { %p93_p3 = scmp.ne.s32.totalorder %s14_s7, %s92_s15  ;;  %p98_p5 = scmp.lt.s32.totalorder %s92_s15, %s92_s15 }
   0xb   :  { %p99_p6 = por %p98_p5, %p97_p4 }
   0xd   :  { %p100_p7 = pnand %p99_p6, %p93_p3 }
   0xf   :  { %103 = shalt.err (!%p100_p7)
}
  0x10   :  { %s131_s16 = smov 128   ;;  %s132_s17 = smov 8  }
  0x11   :  { %19 = dma.hbm_to_vmem [thread:$0]  %s174_s0, 256, %s14_s7, [#allocation3], %s131_s16, %s131_s16, %s132_s17  }
  0x12   :  { %126 = dma.done.wait [#allocation3], 256  }
  0x13   :  { %127 = vsyncadd [#allocation3], 4294967040  ;;  %v23_v0 = vld [vmem:[#allocation2] sm:$0xff]  ;;  %v24_v1 = vld [vmem:[#allocation2 + $0x8] sm:$0xff]  ;;  %s133_s0 = smov [#allocation5]  }
  0x14   :  { %v25_v2 = vadd.f32 1.0, %v23_v0  ;;  %v34_v3 = vadd.f32 1.0, %v24_v1  ;;  %v28_v4 = vmul.f32 -0.5, %v23_v0  ;;  %v37_v5 = vmul.f32 -0.5, %v24_v1  ;;  %s62_s20 = sshll.u32 %s133_s0, 4  ;;  %s63_s20 = int_to_ptr.vmem [resolvable:$true] %s62_s20 }
  0x15   :  { %v31_v7 = vand.u32 2147483647, %v23_v0  ;;  %v40_v9 = vand.u32 2147483647, %v24_v1  ;;  %s104_s21 = scalar_lea.vmem %s63_s20, 256  ;;  %p109_p9 = scmp.lt.s32.totalorder %s63_s20, %s63_s20 }
  0x16   :  { %78 = vlog2.f32 %v25_v2  ;;  %v29_v6 = vadd.f32 1.0, %v28_v4  ;;  %v38_v8 = vadd.f32 1.0, %v37_v5  ;;  %p105_p8 = scmp.ne.s32.totalorder %s63_s20, %s104_s21  ;;  %p110_p10 = scmp.lt.s32.totalorder %s104_s21, %s104_s21 }
  0x17   :  { %80 = vlog2.f32 %v34_v3  ;;  %vm32_vm0 = vcmp.lt.f32.partialorder %v31_v7, 0.0004427343  ;;  %vm41_vm1 = vcmp.lt.f32.partialorder %v40_v9, 0.0004427343 }
  0x18   :  { %v30_v10 = vmul.f32 %v29_v6, %v23_v0  ;;  %v39_v14 = vmul.f32 %v38_v8, %v24_v1  ;;  %p111_p11 = por %p110_p10, %p109_p9 }
  0x1a   :  { %p112_p12 = pnand %p111_p11, %p105_p8 }
  0x20   :  { %v79_v11 = vpop.eup %78 }
  0x21   :  { %v81_v12 = vpop.eup %80  ;;  %v27_v13 = vmul.f32 0.6931472, %v79_v11 }
  0x22   :  { %v36_v15 = vmul.f32 0.6931472, %v81_v12 }
  0x23   :  { %v33_v16 = vsel %vm32_vm0, %v30_v10, %v27_v13 }
  0x24   :  { %47 = vadd.xlane.f32.xlu0 %v33_v16  ;;  %v42_v17 = vsel %vm41_vm1, %v39_v14, %v36_v15 }
  0x28   :  { %49 = vadd.xlane.f32.xlu0 %v42_v17 }
  0xb1   :  { %v48_v18 = vpop.xlane.xlu0 %47 }
  0xb2   :  { %v51_v19 = vmul.f32 0.0078125, %v48_v18 }
  0xb4   :  { %v53_v20 = vsub.f32 %v33_v16, %v51_v19 }
  0xb5   :  { %v50_v21 = vpop.xlane.xlu0 %49 }
  0xb6   :  { %55 = vst [vmem:[#allocation5] sm:$0xff] %v53_v20  ;;  %v52_v22 = vmul.f32 0.0078125, %v50_v21 }
  0xb8   :  { %v54_v23 = vsub.f32 %v42_v17, %v52_v22 }
  0xba   :  { %56 = vst [vmem:[#allocation5 + $0x8] sm:$0xff] %v54_v23 }
  0xbb   :  { %115 = shalt.err (!%p112_p12)
}
  0xbc   :  { %s116_s24 = scalar_lea.hbm %s175_s1, 256 }
  0xbd   :  { %p117_p13 = scmp.ne.s32.totalorder %s175_s1, %s116_s24  ;;  %p120_p0 = scmp.lt.u32.totalorder %s116_s24, %s175_s1 }
  0xbf   :  { %p122_p1 = pnand %p120_p0, %p117_p13 }
  0xc1   :  { %125 = shalt.err (!%p122_p1)
}
  0xc2   :  { %68 = dma.vmem_to_hbm [thread:$0]  %s63_s20, 256, %s175_s1, [#allocation4], %s131_s16, %s131_s16, %s132_s17  }
  0xc3   :  { %128 = dma.done.wait [#allocation4], 256  }
  0xc4   :  { %129 = vsyncadd [#allocation4], 4294967040 }
  0xc5   :  { %72 = vsyncpa [#allocation3], 1 }
  0xc6   :  { %73 = vsyncpa [#allocation4], 1 }

</bundles_post_ra>
